<compile_context>
chip_gen: v6e
topology: v6e:2x2x1
jax: 0.10.0
libtpu: 0.0.40
codegen_flags: <defaults>
</compile_context>

<pallas_src>
import functools

import jax
import jax.numpy as jnp
from jax.experimental import pallas as pl
from jax.experimental.pallas import tpu as pltpu

HIDDEN = 16


def _round_up(x, m):
    return (x + m - 1) // m * m


def _param_layout(in_dim, hidden=HIDDEN):
    """Row offsets of each parameter inside the packed (rows, hidden) block.

    Every group starts on an 8-aligned sublane row.
    """
    r_w1t = 0                                   # W1^T : (hidden, in_dim)
    r_b1 = _round_up(r_w1t + hidden, 8)         # b1   : (hidden, 1) column
    r_w2t = _round_up(r_b1 + hidden, 8)         # W2^T : (hidden, hidden)
    r_b2 = _round_up(r_w2t + hidden, 8)         # b2   : (hidden, 1) column
    r_w3 = _round_up(r_b2 + hidden, 8)          # w3^T : (1, hidden) row
    r_b3 = _round_up(r_w3 + 1, 8)               # b3   : scalar at [r_b3, 0]
    rows = _round_up(r_b3 + 1, 8)
    return dict(w1t=r_w1t, b1=r_b1, w2t=r_w2t, b2=r_b2,
                w3=r_w3, b3=r_b3, rows=rows)


def pack_params(params, state_dim, action_dim):
    """Pack all weights/biases (pre-transposed for the feature-major layout)
    into one small VMEM-resident (rows, 16) block."""
    in_dim = state_dim + action_dim
    L = _param_layout(in_dim)
    p = jnp.zeros((L["rows"], HIDDEN), jnp.float32)
    # params["w1"]: (in_dim, 16) -> store W1^T (16, in_dim)
    p = p.at[L["w1t"]:L["w1t"] + HIDDEN, :in_dim].set(params["w1"].T)
    p = p.at[L["b1"]:L["b1"] + HIDDEN, 0].set(params["b1"][0])
    p = p.at[L["w2t"]:L["w2t"] + HIDDEN, :HIDDEN].set(params["w2"].T)
    p = p.at[L["b2"]:L["b2"] + HIDDEN, 0].set(params["b2"][0])
    p = p.at[L["w3"], :HIDDEN].set(params["w3"][:, 0])     # w3 (16,1) as a row
    p = p.at[L["b3"], 0].set(params["b3"][0, 0])
    return p


def critic_kernel(x_ref, params_ref, q_ref, *, in_dim):
    L = _param_layout(in_dim)
    H = HIDDEN

    x = x_ref[...]                                               # (in_dim, bm)

    w1t = params_ref[L["w1t"]:L["w1t"] + H, 0:in_dim]            # (16, in_dim)
    b1 = params_ref[L["b1"]:L["b1"] + H, 0:1]                    # (16, 1)
    w2t = params_ref[L["w2t"]:L["w2t"] + H, 0:H]                 # (16, 16)
    b2 = params_ref[L["b2"]:L["b2"] + H, 0:1]                    # (16, 1)
    w3 = params_ref[L["w3"]:L["w3"] + 1, 0:H]                    # (1, 16)
    b3 = params_ref[L["b3"]:L["b3"] + 1, 0:1]                    # (1, 1)

    # fc1: single fused K=in_dim matmul (state & action already packed).
    h1 = jnp.dot(w1t, x, preferred_element_type=jnp.float32) + b1
    h1 = jnp.maximum(h1, 0.0)                                    # (16, bm)

    # fc2
    h2 = jnp.dot(w2t, h1, preferred_element_type=jnp.float32) + b2
    h2 = jnp.maximum(h2, 0.0)                                    # (16, bm)

    # fc3: (1,16) @ (16,bm) -> (1, bm), already lane-dense; no transpose.
    q = jnp.dot(w3, h2, preferred_element_type=jnp.float32) + b3
    q_ref[...] = q.astype(q_ref.dtype)


def critic_forward(state, action, packed_params, *, block_rows=None):
    """state: (B, S) f32, action: (B, A) f32 -> q: (B, 1) f32.

    block_rows (if given) must be a multiple of 128.
    """
    B, state_dim = state.shape
    _, action_dim = action.shape
    in_dim = state_dim + action_dim

    # Feature-major (batch-on-lane) input: (in_dim, B).  Tiny wrapper-side
    # repack that makes the input DMA and all activations lane-dense.
    x = jnp.concatenate([state, action], axis=1).T               # (in_dim, B)

    if block_rows is None:
        # Two balanced tiles when the batch is large enough (lets v7x's two
        # TensorCores split the "parallel" batch axis) while keeping grid-step
        # overhead minimal on single-TC v5e/v6e; capped at 2048 lanes/tile.
        block_rows = max(128, min(2048, _round_up(pl.cdiv(B, 2), 128)))
    num_tiles = pl.cdiv(B, block_rows)

    kernel = functools.partial(critic_kernel, in_dim=in_dim)

    q_lanes = pl.pallas_call(
        kernel,
        out_shape=jax.ShapeDtypeStruct((1, B), jnp.float32),
        grid=(num_tiles,),
        in_specs=[
            # Batch tiles of the packed (in_dim, B) input; the final partial
            # block is handled by Mosaic (garbage lanes, masked stores).
            pl.BlockSpec((in_dim, block_rows), lambda i: (0, i)),
            # Packed parameters: full block, constant index_map -> fetched
            # once, VMEM-resident across all batch tiles.
            pl.BlockSpec(packed_params.shape, lambda i: (0, 0)),
        ],
        out_specs=pl.BlockSpec((1, block_rows), lambda i: (0, i)),
        compiler_params=pltpu.CompilerParams(
            dimension_semantics=("parallel",)),
    )(x, packed_params)

    # (1, B) row-major is exactly batch order -> free reshape to (B, 1).
    return q_lanes.reshape(B, 1)


def init_params(key, state_dim, action_dim):
    """Deterministic synthetic init (PyTorch Linear-like uniform fan_in bound)."""
    in1, h, out = state_dim + action_dim, HIDDEN, 1
    ks = jax.random.split(key, 6)

    def lin(kw, kb, fan_in, fan_out):
        bound = 1.0 / jnp.sqrt(fan_in)
        # stored as (in, out) — already transposed relative to PyTorch (out, in)
        w = jax.random.uniform(kw, (fan_in, fan_out), jnp.float32, -bound, bound)
        b = jax.random.uniform(kb, (1, fan_out), jnp.float32, -bound, bound)
        return w, b

    w1, b1 = lin(ks[0], ks[1], in1, h)
    w2, b2 = lin(ks[2], ks[3], h, h)
    w3, b3 = lin(ks[4], ks[5], h, out)
    return {"w1": w1, "b1": b1, "w2": w2, "b2": b2, "w3": w3, "b3": b3}


def critic_ref(state, action, p):
    """Pure-JAX reference for correctness check."""
    x = jnp.concatenate([state, action], axis=1)
    h = jnp.maximum(x @ p["w1"] + p["b1"], 0.0)
    h = jnp.maximum(h @ p["w2"] + p["b2"], 0.0)
    return h @ p["w3"] + p["b3"]


if __name__ == "__main__":
    # MountainCarContinuous: state_dim=2, action_dim=1.
    state_dim, action_dim = 2, 1

    key = jax.random.PRNGKey(0)
    k_params, k_state, k_action = jax.random.split(key, 3)

    params = init_params(k_params, state_dim, action_dim)
    packed = pack_params(params, state_dim, action_dim)

    critic = jax.jit(critic_forward, static_argnames=("block_rows",))

    # Small batch (single partial tile, no wrapper-side padding).
    B = 8
    state = jax.random.normal(k_state, (B, state_dim), jnp.float32)
    action = jax.random.normal(k_action, (B, action_dim), jnp.float32)
    q = jax.block_until_ready(critic(state, action, packed))
    q_exp = critic_ref(state, action, params)
    assert q.shape == (B, 1), q.shape
    assert jnp.allclose(q, q_exp, atol=1e-5, rtol=1e-5), (q, q_exp)

    # Larger, non-multiple batch forced onto small tiles: exercises the
    # multi-tile pipelined grid and the masked partial final block.
    B2 = 300
    k2s, k2a = jax.random.split(jax.random.PRNGKey(1))
    state2 = jax.random.normal(k2s, (B2, state_dim), jnp.float32)
    action2 = jax.random.normal(k2a, (B2, action_dim), jnp.float32)
    q2 = jax.block_until_ready(critic(state2, action2, packed, block_rows=128))
    q2_exp = critic_ref(state2, action2, params)
    assert q2.shape == (B2, 1), q2.shape
    assert jnp.allclose(q2, q2_exp, atol=1e-5, rtol=1e-5)

    # Default block_rows path (two balanced tiles) on a mid-size batch.
    B3 = 1000
    k3s, k3a = jax.random.split(jax.random.PRNGKey(2))
    state3 = jax.random.normal(k3s, (B3, state_dim), jnp.float32)
    action3 = jax.random.normal(k3a, (B3, action_dim), jnp.float32)
    q3 = jax.block_until_ready(critic(state3, action3, packed))
    q3_exp = critic_ref(state3, action3, params)
    assert q3.shape == (B3, 1), q3.shape
    assert jnp.allclose(q3, q3_exp, atol=1e-5, rtol=1e-5)

    print("KERNEL_OK")
</pallas_src>

<mosaic_0001>
module attributes {stable_mosaic.version = 11 : i64} {
  func.func @critic_kernel(%arg0: i32, %arg1: memref<3x128xf32, #tpu.memory_space<vmem>>, %arg2: memref<80x16xf32, #tpu.memory_space<vmem>>, %arg3: memref<1x128xf32, #tpu.memory_space<vmem>>) attributes {dimension_semantics = [#tpu.dimension_semantics<parallel>], iteration_bounds = array<i64: 1>, scalar_prefetch = 0 : i64, scratch_operands = 0 : i64, tpu.core_type = #tpu.core_type<tc>, window_params = [{transform_indices = @transform_0, window_bounds = array<i64: 3, 128>}, {pipeline_mode = #tpu.pipeline_mode<synchronous>, transform_indices = @transform_1, window_bounds = array<i64: 80, 16>}, {transform_indices = @transform_2, window_bounds = array<i64: 1, 128>}]} {
    %c0 = arith.constant 0 : index
    %c0_0 = arith.constant 0 : index
    %0 = vector.load %arg1[%c0, %c0_0] : memref<3x128xf32, #tpu.memory_space<vmem>>, vector<3x128xf32>
    %c0_1 = arith.constant 0 : index
    %c0_2 = arith.constant 0 : index
    %1 = vector.load %arg2[%c0_1, %c0_2] : memref<80x16xf32, #tpu.memory_space<vmem>>, vector<16x3xf32>
    %c16 = arith.constant 16 : index
    %c0_3 = arith.constant 0 : index
    %2 = vector.load %arg2[%c16, %c0_3] : memref<80x16xf32, #tpu.memory_space<vmem>>, vector<16x1xf32>
    %c32 = arith.constant 32 : index
    %c0_4 = arith.constant 0 : index
    %3 = vector.load %arg2[%c32, %c0_4] : memref<80x16xf32, #tpu.memory_space<vmem>>, vector<16x16xf32>
    %c48 = arith.constant 48 : index
    %c0_5 = arith.constant 0 : index
    %4 = vector.load %arg2[%c48, %c0_5] : memref<80x16xf32, #tpu.memory_space<vmem>>, vector<16x1xf32>
    %c64 = arith.constant 64 : index
    %c0_6 = arith.constant 0 : index
    %5 = vector.load %arg2[%c64, %c0_6] : memref<80x16xf32, #tpu.memory_space<vmem>>, vector<1x16xf32>
    %c72 = arith.constant 72 : index
    %c0_7 = arith.constant 0 : index
    %6 = vector.load %arg2[%c72, %c0_7] : memref<80x16xf32, #tpu.memory_space<vmem>>, vector<1x1xf32>
    %cst = arith.constant dense<0.000000e+00> : vector<16x128xf32>
    %7 = tpu.matmul %1, %0, %cst {dimension_numbers = #tpu.dot_dimension_numbers<[1], [0], [0], [1], [0, 0, 1, 1], [], []>} : vector<16x3xf32>, vector<3x128xf32>, vector<16x128xf32> -> vector<16x128xf32>
    %8 = vector.broadcast %2 : vector<16x1xf32> to vector<16x128xf32>
    %9 = arith.addf %7, %8 : vector<16x128xf32>
    %cst_8 = arith.constant 0.000000e+00 : f32
    %10 = vector.broadcast %cst_8 : f32 to vector<16x128xf32>
    %11 = arith.maximumf %9, %10 : vector<16x128xf32>
    %cst_9 = arith.constant dense<0.000000e+00> : vector<16x128xf32>
    %12 = tpu.matmul %3, %11, %cst_9 {dimension_numbers = #tpu.dot_dimension_numbers<[1], [0], [0], [1], [0, 0, 1, 1], [], []>} : vector<16x16xf32>, vector<16x128xf32>, vector<16x128xf32> -> vector<16x128xf32>
    %13 = vector.broadcast %4 : vector<16x1xf32> to vector<16x128xf32>
    %14 = arith.addf %12, %13 : vector<16x128xf32>
    %cst_10 = arith.constant 0.000000e+00 : f32
    %15 = vector.broadcast %cst_10 : f32 to vector<16x128xf32>
    %16 = arith.maximumf %14, %15 : vector<16x128xf32>
    %cst_11 = arith.constant dense<0.000000e+00> : vector<1x128xf32>
    %17 = tpu.matmul %5, %16, %cst_11 {dimension_numbers = #tpu.dot_dimension_numbers<[1], [0], [0], [1], [0, 0, 1, 1], [], []>} : vector<1x16xf32>, vector<16x128xf32>, vector<1x128xf32> -> vector<1x128xf32>
    %18 = vector.broadcast %6 : vector<1x1xf32> to vector<1x128xf32>
    %19 = arith.addf %17, %18 : vector<1x128xf32>
    %c0_12 = arith.constant 0 : index
    %c0_13 = arith.constant 0 : index
    %20 = vector.load %arg3[%c0_12, %c0_13] : memref<1x128xf32, #tpu.memory_space<vmem>>, vector<1x128xf32>
    tpu.vector_store %arg3[%c0_12, %c0_13], %19 {strides = array<i32>} : memref<1x128xf32, #tpu.memory_space<vmem>>, vector<1x128xf32>,
    return
  }
  func.func @transform_0(%arg0: i32) -> (i32, i32) {
    %c0_i32 = arith.constant 0 : i32
    %c0_i32_0 = arith.constant 0 : i32
    return %c0_i32, %arg0 : i32, i32
  }
  func.func @transform_1(%arg0: i32) -> (i32, i32) {
    %c0_i32 = arith.constant 0 : i32
    %c0_i32_0 = arith.constant 0 : i32
    %c0_i32_1 = arith.constant 0 : i32
    return %c0_i32, %c0_i32_0 : i32, i32
  }
  func.func @transform_2(%arg0: i32) -> (i32, i32) {
    %c0_i32 = arith.constant 0 : i32
    %c0_i32_0 = arith.constant 0 : i32
    return %c0_i32, %arg0 : i32, i32
  }
}

</mosaic_0001>

<bundles_post_ra>
// kernel: critic_forward.1
= control target key start
LH: loop header
LB: loop body
LE: loop exit
PB: predicated region body
PF: predicated region fallthrough
CT: control target
= control target key end

     0   :  { %vm40_vm0 = vcmask 1042432   ;;  %vm33_vm1 = vcmask 23552   ;;  %v371_v4 = vmov 0   ;;  %s429_s0 = inlined_call_operand.vmem [shape: f32[3,8], index: 0, kind: input, shape index: {}]   ;;  %s430_s1 = inlined_call_operand.vmem [shape: f32[80,16], index: 1, kind: input, shape index: {}]   ;;  %s431_s2 = inlined_call_operand.hbm [shape: f32[1,8], index: 2, kind: output, shape index: {}]  }
   0x1   :  { %v12_v0 = vld [vmem:[%s429_s0] sm:$0x7]  ;;  %v14_v2 = vld [vmem:[%s430_s1 + $0x8] sm:$0xff]  ;;  %v16_v3 = vld [vmem:[%s430_s1 + $0x18] sm:$0xff]  ;;  %347 = vset.pattern.permute.xlu0 %v371_v4 }
   0x2   :  { %v13_v1 = vld [vmem:[%s430_s1] sm:$0xff]  ;;  %324 = vmatprep.subr.msk.mxu0 %vm40_vm0, %v12_v0 }
   0x3   :  { %326 = vmatprep.mubr.msk.f32.mxu0 %vm33_vm1, %v13_v1  ;;  %325 = vmatpush3.msk.msra.mxu0 %vm40_vm0, %v12_v0 }
   0x4   :  { %7 = vsyncpa [#allocation3], 0  ;;  %327 = vmatmul.mubr.msk.f32.vlgmr.msra.gmra.mxu0 %vm33_vm1, %v14_v2  ;;  %30 = vperm.xlu0 %347, %v16_v3   ;;  %v15_v5 = vld [vmem:[%s430_s1 + $0x10] sm:$0xff]  ;;  %v22_v6 = vld [vmem:[%s430_s1 + $0x48] sm:$0x1]  ;;  %vm131_vm2 = vcmask 130048  }
   0x5   :  { %348 = vset.pattern.permute.xlu1 %v371_v4  ;;  %v17_v7 = vld [vmem:[%s430_s1 + $0x20] sm:$0xff]  ;;  %v20_v8 = vld [vmem:[%s430_s1 + $0x38] sm:$0xff]  ;;  %v19_v9 = vld [vmem:[%s430_s1 + $0x30] sm:$0xff]  ;;  %v372_v19 = vmov 0.0   ;;  %vm373_vm3 = vmmov 0   ;;  %s374_s30 = smov [#allocation2]  }
   0x6   :  { %333 = vmatprep.mubr.msk.f32.mxu1 %vm131_vm2, %v17_v7  ;;  %128 = vperm.xlu1 %348, %v20_v8   ;;  %v18_v18 = vld [vmem:[%s430_s1 + $0x28] sm:$0xff]  ;;  %v21_v28 = vld [vmem:[%s430_s1 + $0x40] sm:$0x1]  ;;  %s300_s3 = sshll.u32 %s374_s30, 4  ;;  %s301_s3 = int_to_ptr.vmem [resolvable:$true] %s300_s3 }
   0x7   :  { %336 = vmatprep.subr.mxu0 %v372_v19  ;;  %340 = vmatprep.mubr.msk.f32.mxu0 %vm373_vm3, %v372_v19  ;;  %s349_s4 = scalar_lea.vmem %s301_s3, 16  ;;  %s353_s5 = scalar_lea.vmem %s301_s3, 32 }
   0x8   :  { %25 = vperm.xlu0 %347, %v15_v5   ;;  %p350_p0 = scmp.ne.s32.totalorder %s301_s3, %s349_s4  ;;  %p354_p1 = scmp.lt.s32.totalorder %s301_s3, %s301_s3 }
   0x9   :  { %p355_p2 = scmp.lt.s32.totalorder %s353_s5, %s349_s4 }
   0xa   :  { %123 = vperm.xlu1 %348, %v19_v9  }
   0xb   :  { %p356_p3 = por %p355_p2, %p354_p1 }
   0xc   :  { %217 = vperm.xlu0 %347, %v22_v6  }
   0xd   :  { %p357_p4 = pnand %p356_p3, %p350_p0 }
  0x7f   :  { %v31_v10 = vpop.permute.xlu0 %30 }
  0x81   :  { %v129_v20 = vpop.permute.xlu1 %128 }
  0x83   :  { %v26_v13 = vpop.permute.xlu0 %25 }
  0x85   :  { %v124_v23 = vpop.permute.xlu1 %123 }
  0x87   :  { %v218_v29 = vpop.permute.xlu0 %217 }
  0xc4   :  { %v328_v11 = vpop.f32.mrf.mxu0 }
  0xc5   :  { %v116_v12 = vadd.f32 %v328_v11, %v31_v10 }
  0xc6   :  { %v110_v14 = vpop.f32.mrf.mxu0 }
  0xc7   :  { %v120_v15 = vmax.f32 %v116_v12, 0.0  ;;  %v111_v16 = vadd.f32 %v110_v14, %v26_v13 }
  0xc9   :  { %v119_v17 = vmax.f32 %v111_v16, 0.0  ;;  %329 = vmatprep.subr.mxu1 %v120_v15 }
  0xca   :  { %330 = vmatpush3.msra.mxu1 %v120_v15 }
  0xcb   :  { %331 = vmatprep.subr.mxu1 %v119_v17 }
  0xcc   :  { %332 = vmatpush3.msra.mxu1 %v119_v17 }
  0xcd   :  { %334 = vmatmul.mubr.msk.f32.vlgmr.msra.gmra.mxu1 %vm131_vm2, %v18_v18 }
 0x18d   :  { %v335_v21 = vpop.f32.mrf.mxu1 }
 0x18e   :  { %v210_v22 = vadd.f32 %v335_v21, %v129_v20 }
 0x18f   :  { %v204_v24 = vpop.f32.mrf.mxu1 }
 0x190   :  { %v214_v25 = vmax.f32 %v210_v22, 0.0  ;;  %v205_v26 = vadd.f32 %v204_v24, %v124_v23 }
 0x192   :  { %v213_v27 = vmax.f32 %v205_v26, 0.0  ;;  %337 = vmatpush3.msra.mxu0 %v214_v25 }
 0x193   :  { %338 = vmatprep.subr.mxu0 %v372_v19 }
 0x194   :  { %339 = vmatpush3.msra.mxu0 %v213_v27 }
 0x195   :  { %341 = vmatmul.mubr.msk.f32.vlgmr.msra.gmra.mxu0 %vm131_vm2, %v21_v28 }
 0x255   :  { %v289_v30 = vpop.f32.mrf.mxu0 }
 0x256   :  { %v290_v31 = vadd.f32 %v289_v30, %v218_v29 }
 0x257   :  { %v342_v32 = vpop.f32.mrf.mxu0 }
 0x258   :  { %293 = vst [vmem:[#allocation2] sm:$0x1] %v290_v31 }
 0x259   :  { %360 = shalt.err (!%p357_p4)
}
 0x25a   :  { %303 = dma.vmem_to_hbm [thread:$0]  %s301_s3, 16, %s431_s2, [#allocation3]  }
 0x25b   :  { %369 = dma.done.wait [#allocation3], 16  }
 0x25c   :  { %370 = vsyncadd [#allocation3], 4294967280 }
 0x25d   :  { %307 = vsyncpa [#allocation3], 1 }

</bundles_post_ra>
